<compile_context>
chip_gen: v6e
topology: v6e:2x2x1
jax: 0.10.0
libtpu: 0.0.40
codegen_flags: <defaults>
</compile_context>

<pallas_src>
import jax
import jax.numpy as jnp
from jax.experimental import pallas as pl
from jax.experimental.pallas import tpu as pltpu


def _bahdanau_kernel(wq_ref, k_ref, ua_ref, bu_ref, va_ref, ctx_ref, w_ref):
    # wq_ref: (TB, H) f32   -- Wa(query)+Wa_b, precomputed in the wrapper
    # k_ref : (TB, S, H) bf16
    # ua_ref: (H, H) bf16 (in->out), bu_ref: (1, H) f32, va_ref: (1, H) f32
    # ctx_ref: (TB, H) f32, w_ref: (TB, S) f32
    tb, s, h = k_ref.shape

    # Keys arrive as bf16 (halves HBM->VMEM DMA); widen once for the f32 math.
    k = k_ref[...].astype(jnp.float32)                        # (TB, S, H)

    # Ua projection with batch folded into the matmul M dimension.
    # (f32 reshape is a free re-labeling when S is a multiple of 8.)
    k2d = k.reshape(tb * s, h)
    uk = jnp.dot(k2d.astype(jnp.bfloat16), ua_ref[...],
                 preferred_element_type=jnp.float32)          # (TB*S, H), f32 accum
    uk = uk.reshape(tb, s, h) + bu_ref[...].reshape(1, 1, h)  # (TB, S, H)

    # tanh(Wa(q) + Ua(k) + biases) in f32 on the VPU/EUP.
    t = jnp.tanh(uk + wq_ref[...][:, None, :])                # (TB, S, H)

    # Va projection as a VPU multiply + lane reduce (Va bias dropped: softmax is
    # shift-invariant, so weights and context are unchanged).
    scores = jnp.sum(t * va_ref[...].reshape(1, 1, h), axis=-1)   # (TB, S)

    # Softmax along the lane axis (S); no transposes anywhere.
    m = jnp.max(scores, axis=-1, keepdims=True)
    e = jnp.exp(scores - m)
    denom = jnp.sum(e, axis=-1, keepdims=True)
    w = e * pl.reciprocal(denom, approx=True)                 # EUP vrcp

    # context[b] = sum_s w[b, s] * keys[b, s, :] -- VPU multiply + sublane reduce.
    ctx = jnp.sum(w[:, :, None] * k, axis=1)                  # (TB, H)

    w_ref[...] = w.astype(w_ref.dtype)
    ctx_ref[...] = ctx.astype(ctx_ref.dtype)


def _pick_batch_tile(B, S, H, budget_bytes=24 * 1024 * 1024):
    """Batch rows per grid step, sized against a conservative VMEM budget
    (double-buffered bf16 keys block + f32 wq/context/weights blocks) so the same
    tile also fits v7x's 64 MiB VMEM. Constant (H,H)/(1,H) weight blocks are tiny
    and never re-fetched (their block index is constant across the grid)."""
    per_batch = 2 * (S * H * 2) + 2 * (H * 4) + H * 4 + S * 4
    tb = max(1, budget_bytes // max(per_batch, 1))
    tb = int(min(tb, 64, B))
    if tb < B:
        # When the batch axis is tiled, the block's second-to-last dims must stay
        # sublane (8) aligned.
        tb = max(8, (tb // 8) * 8)
    return tb


@jax.jit
def bahdanau_attention(query, keys, params):
    """query: (B, 1, H), keys: (B, S, H). Returns (context (B,1,H), weights (B,1,S))."""
    B, _, H = query.shape
    S = keys.shape[1]
    out_dtype = query.dtype

    # Hoisted query projection: one batched f32 XLA matmul instead of B tiny
    # (1,H)x(H,H) MXU calls inside the kernel; Wa never has to live in VMEM.
    wq = (query.reshape(B, H).astype(jnp.float32)
          @ params["Wa_w"].T.astype(jnp.float32)
          + params["Wa_b"].astype(jnp.float32))                   # (B, H)

    # bf16 MXU operands (f32 accumulation inside the kernel).
    keys_bf = keys.astype(jnp.bfloat16)                           # (B, S, H)
    ua_t = params["Ua_w"].T.astype(jnp.bfloat16)                  # (H, H) in->out
    bu = params["Ua_b"].reshape(1, H).astype(jnp.float32)
    va = params["Va_w"].reshape(1, H).astype(jnp.float32)         # row, not column
    # params["Va_b"] intentionally unused: softmax shift-invariance.

    TB = _pick_batch_tile(B, S, H)
    B_pad = ((B + TB - 1) // TB) * TB
    if B_pad != B:
        pad = B_pad - B
        wq = jnp.pad(wq, ((0, pad), (0, 0)))
        keys_bf = jnp.pad(keys_bf, ((0, pad), (0, 0), (0, 0)))

    ctx, w = pl.pallas_call(
        _bahdanau_kernel,
        out_shape=(
            jax.ShapeDtypeStruct((B_pad, H), jnp.float32),
            jax.ShapeDtypeStruct((B_pad, S), jnp.float32),
        ),
        grid_spec=pltpu.PrefetchScalarGridSpec(
            num_scalar_prefetch=0,
            grid=(B_pad // TB,),
            in_specs=[
                pl.BlockSpec((TB, H), lambda b: (b, 0)),        # Wa(q)+b  (f32)
                pl.BlockSpec((TB, S, H), lambda b: (b, 0, 0)),  # keys     (bf16)
                pl.BlockSpec((H, H), lambda b: (0, 0)),         # Ua^T     (bf16)
                pl.BlockSpec((1, H), lambda b: (0, 0)),         # Ua bias  (f32)
                pl.BlockSpec((1, H), lambda b: (0, 0)),         # Va row   (f32)
            ],
            out_specs=[
                pl.BlockSpec((TB, H), lambda b: (b, 0)),        # context
                pl.BlockSpec((TB, S), lambda b: (b, 0)),        # weights
            ],
        ),
        compiler_params=pltpu.CompilerParams(
            dimension_semantics=("parallel",),   # shards batch blocks across TCs (v7x)
            vmem_limit_bytes=48 * 1024 * 1024,   # safe on v5e/v6e (128 MiB) and v7x (64 MiB)
        ),
    )(wq, keys_bf, ua_t, bu, va)

    context = ctx[:B].reshape(B, 1, H).astype(out_dtype)
    weights = w[:B].reshape(B, 1, S).astype(out_dtype)
    return context, weights


def _reference(query, keys, params):
    # Pure-JAX f32 reference mirroring the PyTorch module exactly.
    wq = query @ params["Wa_w"].T + params["Wa_b"]                       # (B, 1, H)
    uk = keys @ params["Ua_w"].T + params["Ua_b"]                        # (B, S, H)
    scores = jnp.tanh(wq + uk) @ params["Va_w"].T + params["Va_b"]       # (B, S, 1)
    scores = jnp.transpose(scores, (0, 2, 1))                            # (B, 1, S)
    weights = jax.nn.softmax(scores, axis=-1)
    context = jnp.einsum("bqs,bsh->bqh", weights, keys)
    return context, weights


if __name__ == "__main__":
    B, S, H = 2, 8, 32
    key = jax.random.PRNGKey(0)
    k_q, k_k, k1, k2, k3, k4, k5, k6 = jax.random.split(key, 8)

    query = jax.random.normal(k_q, (B, 1, H), dtype=jnp.float32)
    keys = jax.random.normal(k_k, (B, S, H), dtype=jnp.float32)

    scale = 1.0 / jnp.sqrt(H)
    params = {
        "Wa_w": jax.random.uniform(k1, (H, H), minval=-scale, maxval=scale, dtype=jnp.float32),
        "Wa_b": jax.random.uniform(k2, (H,), minval=-scale, maxval=scale, dtype=jnp.float32),
        "Ua_w": jax.random.uniform(k3, (H, H), minval=-scale, maxval=scale, dtype=jnp.float32),
        "Ua_b": jax.random.uniform(k4, (H,), minval=-scale, maxval=scale, dtype=jnp.float32),
        "Va_w": jax.random.uniform(k5, (1, H), minval=-scale, maxval=scale, dtype=jnp.float32),
        "Va_b": jax.random.uniform(k6, (1,), minval=-scale, maxval=scale, dtype=jnp.float32),
    }

    context, weights = bahdanau_attention(query, keys, params)
    jax.block_until_ready((context, weights))

    ctx_ref, w_ref = _reference(query, keys, params)
    assert context.shape == (B, 1, H) and weights.shape == (B, 1, S)
    # bf16 MXU operands + approx reciprocal -> compare with bf16-appropriate tolerances.
    assert jnp.allclose(weights, w_ref, atol=1e-2, rtol=1e-2)
    assert jnp.allclose(context, ctx_ref, atol=2e-2, rtol=2e-2)

    print("KERNEL_OK")
</pallas_src>

<mosaic_0001>
module attributes {stable_mosaic.version = 11 : i64} {
  func.func @_bahdanau_kernel(%arg0: i32, %arg1: memref<2x32xf32, #tpu.memory_space<vmem>>, %arg2: memref<2x8x32xbf16, #tpu.memory_space<vmem>>, %arg3: memref<32x32xbf16, #tpu.memory_space<vmem>>, %arg4: memref<1x32xf32, #tpu.memory_space<vmem>>, %arg5: memref<1x32xf32, #tpu.memory_space<vmem>>, %arg6: memref<2x32xf32, #tpu.memory_space<vmem>>, %arg7: memref<2x8xf32, #tpu.memory_space<vmem>>) attributes {dimension_semantics = [#tpu.dimension_semantics<parallel>], iteration_bounds = array<i64: 1>, scalar_prefetch = 0 : i64, scratch_operands = 0 : i64, tpu.core_type = #tpu.core_type<tc>, window_params = [{transform_indices = @transform_0, window_bounds = array<i64: 2, 32>}, {transform_indices = @transform_1, window_bounds = array<i64: 2, 8, 32>}, {pipeline_mode = #tpu.pipeline_mode<synchronous>, transform_indices = @transform_2, window_bounds = array<i64: 32, 32>}, {pipeline_mode = #tpu.pipeline_mode<synchronous>, transform_indices = @transform_3, window_bounds = array<i64: 1, 32>}, {pipeline_mode = #tpu.pipeline_mode<synchronous>, transform_indices = @transform_4, window_bounds = array<i64: 1, 32>}, {transform_indices = @transform_5, window_bounds = array<i64: 2, 32>}, {transform_indices = @transform_6, window_bounds = array<i64: 2, 8>}]} {
    %c0 = arith.constant 0 : index
    %c0_0 = arith.constant 0 : index
    %c0_1 = arith.constant 0 : index
    %0 = vector.load %arg2[%c0, %c0_0, %c0_1] : memref<2x8x32xbf16, #tpu.memory_space<vmem>>, vector<2x8x32xbf16>
    %1 = arith.extf %0 : vector<2x8x32xbf16> to vector<2x8x32xf32>
    %2 = vector.shape_cast %1 : vector<2x8x32xf32> to vector<16x32xf32>
    %3 = arith.truncf %2 : vector<16x32xf32> to vector<16x32xbf16>
    %c0_2 = arith.constant 0 : index
    %c0_3 = arith.constant 0 : index
    %4 = vector.load %arg3[%c0_2, %c0_3] : memref<32x32xbf16, #tpu.memory_space<vmem>>, vector<32x32xbf16>
    %cst = arith.constant dense<0.000000e+00> : vector<16x32xf32>
    %5 = tpu.matmul %3, %4, %cst {dimension_numbers = #tpu.dot_dimension_numbers<[1], [0], [0], [1], [0, 0, 1, 1], [], []>} : vector<16x32xbf16>, vector<32x32xbf16>, vector<16x32xf32> -> vector<16x32xf32>
    %6 = vector.shape_cast %5 : vector<16x32xf32> to vector<2x8x32xf32>
    %c0_4 = arith.constant 0 : index
    %c0_5 = arith.constant 0 : index
    %7 = vector.load %arg4[%c0_4, %c0_5] : memref<1x32xf32, #tpu.memory_space<vmem>>, vector<1x32xf32>
    %8 = vector.shape_cast %7 : vector<1x32xf32> to vector<1x1x32xf32>
    %9 = vector.broadcast %8 : vector<1x1x32xf32> to vector<2x8x32xf32>
    %10 = arith.addf %6, %9 : vector<2x8x32xf32>
    %c0_6 = arith.constant 0 : index
    %c0_7 = arith.constant 0 : index
    %11 = vector.load %arg1[%c0_6, %c0_7] : memref<2x32xf32, #tpu.memory_space<vmem>>, vector<2x32xf32>
    %12 = vector.shape_cast %11 : vector<2x32xf32> to vector<2x1x32xf32>
    %13 = vector.broadcast %12 : vector<2x1x32xf32> to vector<2x8x32xf32>
    %14 = arith.addf %10, %13 : vector<2x8x32xf32>
    %15 = math.tanh %14 : vector<2x8x32xf32>
    %c0_8 = arith.constant 0 : index
    %c0_9 = arith.constant 0 : index
    %16 = vector.load %arg5[%c0_8, %c0_9] : memref<1x32xf32, #tpu.memory_space<vmem>>, vector<1x32xf32>
    %17 = vector.shape_cast %16 : vector<1x32xf32> to vector<1x1x32xf32>
    %18 = vector.broadcast %17 : vector<1x1x32xf32> to vector<2x8x32xf32>
    %19 = arith.mulf %15, %18 : vector<2x8x32xf32>
    %cst_10 = arith.constant dense<0.000000e+00> : vector<2x8xf32>
    %20 = vector.multi_reduction <add>, %19, %cst_10 [2] : vector<2x8x32xf32> to vector<2x8xf32>
    %cst_11 = arith.constant dense<0xFF800000> : vector<2xf32>
    %21 = vector.multi_reduction <maximumf>, %20, %cst_11 [1] : vector<2x8xf32> to vector<2xf32>
    %22 = vector.shape_cast %21 : vector<2xf32> to vector<2x1xf32>
    %23 = vector.broadcast %22 : vector<2x1xf32> to vector<2x8xf32>
    %24 = arith.subf %20, %23 : vector<2x8xf32>
    %25 = math.exp %24 : vector<2x8xf32>
    %cst_12 = arith.constant dense<0.000000e+00> : vector<2xf32>
    %26 = vector.multi_reduction <add>, %25, %cst_12 [1] : vector<2x8xf32> to vector<2xf32>
    %27 = vector.shape_cast %26 : vector<2xf32> to vector<2x1xf32>
    %28 = tpu.reciprocal %27 {approx = true} : vector<2x1xf32> -> vector<2x1xf32>
    %29 = vector.broadcast %28 : vector<2x1xf32> to vector<2x8xf32>
    %30 = arith.mulf %25, %29 : vector<2x8xf32>
    %31 = vector.shape_cast %30 : vector<2x8xf32> to vector<2x8x1xf32>
    %32 = vector.broadcast %31 : vector<2x8x1xf32> to vector<2x8x32xf32>
    %33 = arith.mulf %32, %1 : vector<2x8x32xf32>
    %cst_13 = arith.constant dense<0.000000e+00> : vector<2x32xf32>
    %34 = vector.multi_reduction <add>, %33, %cst_13 [1] : vector<2x8x32xf32> to vector<2x32xf32>
    %c0_14 = arith.constant 0 : index
    %c0_15 = arith.constant 0 : index
    %35 = vector.load %arg7[%c0_14, %c0_15] : memref<2x8xf32, #tpu.memory_space<vmem>>, vector<2x8xf32>
    tpu.vector_store %arg7[%c0_14, %c0_15], %30 {strides = array<i32>} : memref<2x8xf32, #tpu.memory_space<vmem>>, vector<2x8xf32>,
    %c0_16 = arith.constant 0 : index
    %c0_17 = arith.constant 0 : index
    %36 = vector.load %arg6[%c0_16, %c0_17] : memref<2x32xf32, #tpu.memory_space<vmem>>, vector<2x32xf32>
    tpu.vector_store %arg6[%c0_16, %c0_17], %34 {strides = array<i32>} : memref<2x32xf32, #tpu.memory_space<vmem>>, vector<2x32xf32>,
    return
  }
  func.func @transform_0(%arg0: i32) -> (i32, i32) {
    %c0_i32 = arith.constant 0 : i32
    %c0_i32_0 = arith.constant 0 : i32
    return %arg0, %c0_i32 : i32, i32
  }
  func.func @transform_1(%arg0: i32) -> (i32, i32, i32) {
    %c0_i32 = arith.constant 0 : i32
    %c0_i32_0 = arith.constant 0 : i32
    %c0_i32_1 = arith.constant 0 : i32
    return %arg0, %c0_i32, %c0_i32_0 : i32, i32, i32
  }
  func.func @transform_2(%arg0: i32) -> (i32, i32) {
    %c0_i32 = arith.constant 0 : i32
    %c0_i32_0 = arith.constant 0 : i32
    %c0_i32_1 = arith.constant 0 : i32
    return %c0_i32, %c0_i32_0 : i32, i32
  }
  func.func @transform_3(%arg0: i32) -> (i32, i32) {
    %c0_i32 = arith.constant 0 : i32
    %c0_i32_0 = arith.constant 0 : i32
    %c0_i32_1 = arith.constant 0 : i32
    return %c0_i32, %c0_i32_0 : i32, i32
  }
  func.func @transform_4(%arg0: i32) -> (i32, i32) {
    %c0_i32 = arith.constant 0 : i32
    %c0_i32_0 = arith.constant 0 : i32
    %c0_i32_1 = arith.constant 0 : i32
    return %c0_i32, %c0_i32_0 : i32, i32
  }
  func.func @transform_5(%arg0: i32) -> (i32, i32) {
    %c0_i32 = arith.constant 0 : i32
    %c0_i32_0 = arith.constant 0 : i32
    return %arg0, %c0_i32 : i32, i32
  }
  func.func @transform_6(%arg0: i32) -> (i32, i32) {
    %c0_i32 = arith.constant 0 : i32
    %c0_i32_0 = arith.constant 0 : i32
    return %arg0, %c0_i32 : i32, i32
  }
}

</mosaic_0001>

<bundles_post_ra>
// kernel: bahdanau_attention.1
= control target key start
LH: loop header
LB: loop body
LE: loop exit
PB: predicated region body
PF: predicated region fallthrough
CT: control target
= control target key end

     0   :  { %12 = vsyncpa [#allocation3], 0  ;;  %v379_v1 = vmov 0.0   ;;  %vm380_vm0 = vmmov 0   ;;  %s473_s0 = inlined_call_operand.vmem [shape: f32[2,32], index: 0, kind: input, shape index: {}]   ;;  %s474_s1 = inlined_call_operand.vmem [shape: bf16[2,8,32], index: 1, kind: input, shape index: {}]   ;;  %s475_s2 = inlined_call_operand.vmem [shape: bf16[32,32], index: 2, kind: input, shape index: {}]   ;;  %s476_s3 = inlined_call_operand.vmem [shape: f32[1,32], index: 3, kind: input, shape index: {}]   ;;  %s477_s4 = inlined_call_operand.vmem [shape: f32[1,32], index: 4, kind: input, shape index: {}]   ;;  %s478_s5 = inlined_call_operand.hbm [shape: f32[2,32], index: 5, kind: output, shape index: {0}]   ;;  %s479_s6 = inlined_call_operand.hbm [shape: f32[2,8], index: 6, kind: output, shape index: {1}]  }
   0x1   :  { %v321_v0 = vld [vmem:[%s475_s2 + $0x8] sm:$0xff]   ;;  %305 = vmatprep.subr.bf16.mxu0 %v379_v1  ;;  %v322_v2 = vld [vmem:[%s475_s2] sm:$0xff]   ;;  %309 = vmatprep.mubr.msk.bf16.mxu0 %vm380_vm0, %v379_v1 }
   0x2   :  { %306 = vmatpush3.bf16.msra.mxu0 %v321_v0  ;;  %v429_v3 = vld [vmem:[%s474_s1] sm:$0xff]  }
   0x3   :  { %13 = vsyncpa [#allocation5], 0  ;;  %307 = vmatprep.subr.bf16.mxu0 %v379_v1  ;;  %vm46_vm1 = vcmask 261120   ;;  %v381_v4 = vmov 1966171168   ;;  %v113_v6 = vlaneseq  ;;  %vm165_vm2 = vcmask 1041409  }
   0x4   :  { %v111_v5 = vunpack.c.l.s4 %v381_v4  ;;  %v300_v10 = vld.sshfl [vmem:[%s473_s0] sm:$0x11 pattern:$0x75316420]  ;;  %vm168_vm3 = vcmask 58368   ;;  %v382_v41 = vmov 0   ;;  %v27_v0 = vunpack.c.l.bf16 %v429_v3 }
   0x5   :  { %v433_v8 = vshrl.u32 %v113_v6, 7  ;;  %v109_v13 = vcombine.high %v300_v10, %v300_v10  ;;  %v299_v14 = vld [vmem:[%s476_s3] ss:$0 sm:$0xff]  ;;  %v156_v33 = vand.u32 127, %v113_v6  ;;  %320 = vset.pattern.permute.xlu0 %v382_v41  ;;  %319 = vset.pattern.permute.xlu1 %v382_v41  ;;  %v28_v4 = vunpack.c.h.bf16 %v429_v3  ;;  %s383_s3 = smov [#allocation4]  }
   0x6   :  { %308 = vmatpush3.bf16.msra.mxu0 %v322_v2  ;;  %v112_v7 = vunpack.c.0.s8 %v111_v5  ;;  %v301_v26 = vld [vmem:[%s477_s4] ss:$0 sm:$0xff]  ;;  %s283_s4 = sshll.u32 %s383_s3, 4  ;;  %s284_s4 = int_to_ptr.vmem [resolvable:$true] %s283_s4 }
   0x7   :  { %v440_v12 = vsub.s32 0, %v433_v8  ;;  %v159_v35 = vsub.s32 %v156_v33, %v433_v8  ;;  %v179_v42 = vsub.s32 1, %v433_v8  ;;  %s335_s30 = scalar_lea.vmem %s284_s4, 32  ;;  %p340_p1 = scmp.lt.s32.totalorder %s284_s4, %s284_s4 }
   0x8   :  { %v115_v9 = vsub.s32 %v112_v7, %v433_v8  ;;  %p336_p0 = scmp.ne.s32.totalorder %s284_s4, %s335_s30  ;;  %p341_p2 = scmp.lt.s32.totalorder %s335_s30, %s335_s30 }
   0x9   :  { %310 = vmatmul.mubr.msk.bf16.vlgmr.msra.gmra.mxu0 %vm46_vm1, %v429_v3 }
   0xa   :  { %v116_v11 = vrot.slane %v300_v10, %v115_v9  ;;  %v123_v16 = vrot.slane %v109_v13, %v115_v9  ;;  %p342_p3 = por %p341_p2, %p340_p1 }
   0xc   :  { %v127_v15 = vrot.slane %v116_v11, %v440_v12  ;;  %v131_v21 = vrot.slane %v123_v16, %v440_v12  ;;  %p343_p4 = pnand %p342_p3, %p336_p0 }
  0xc9   :  { %v84_v17 = vpop.f32.mrf.mxu0 }
  0xca   :  { %v98_v18 = vadd.f32 %v299_v14, %v84_v17 }
  0xcb   :  { %v311_v19 = vpop.f32.mrf.mxu0 }
  0xcc   :  { %v134_v20 = vadd.f32 %v127_v15, %v98_v18 }
  0xcd   :  { %v87_v22 = vpop.f32.mrf.mxu0 }
  0xce   :  { %325 = vtanh.f32 %v134_v20  ;;  %v99_v23 = vadd.f32 %v299_v14, %v87_v22 }
  0xcf   :  { %v312_v24 = vpop.f32.mrf.mxu0 }
  0xd0   :  { %v135_v25 = vadd.f32 %v131_v21, %v99_v23 }
  0xd2   :  { %327 = vtanh.f32 %v135_v25 }
  0xdb   :  { %v326_v27 = vpop.eup %325 }
  0xdc   :  { %v145_v28 = vmul.f32 %v326_v27, %v301_v26 }
  0xde   :  { %v147_v29 = vsel %vm46_vm1, %v145_v28, 0.0 }
  0xdf   :  { %v328_v30 = vpop.eup %327  ;;  %148 = vadd.xlane.f32.xlu0 %v147_v29 }
  0xe0   :  { %v146_v31 = vmul.f32 %v328_v30, %v301_v26 }
  0xe2   :  { %v150_v32 = vsel %vm46_vm1, %v146_v31, 0.0 }
  0xe3   :  { %151 = vadd.xlane.f32.xlu0 %v150_v32 }
 0x168   :  { %v149_v34 = vpop.xlane.xlu0 %148 }
 0x169   :  { %v160_v37 = vrot.slane %v149_v34, %v159_v35 }
 0x16c   :  { %v152_v36 = vpop.xlane.xlu0 %151 }
 0x16d   :  { %v164_v38 = vrot.slane %v152_v36, %v159_v35 }
 0x16f   :  { %v166_v39 = vsel %vm165_vm2, %v164_v38, %v160_v37 }
 0x170   :  { %v169_v40 = vsel %vm168_vm3, %v166_v39, -inf }
 0x171   :  { %170 = vmax.xlane.f32.xlu1 %v169_v40 }
 0x1fa   :  { %v171_v43 = vpop.xlane.xlu1 %170 }
 0x1fb   :  { %v176_v44 = vrot.slane %v171_v43, %v440_v12  ;;  %v180_v45 = vrot.slane %v171_v43, %v179_v42 }
 0x1fd   :  { %v183_v46 = vsub.f32 %v149_v34, %v176_v44  ;;  %v184_v47 = vsub.f32 %v152_v36, %v180_v45 }
 0x1ff   :  { %v185_v48 = vmul.f32 1.442695, %v183_v46  ;;  %v187_v49 = vmul.f32 1.442695, %v184_v47 }
 0x201   :  { %329 = vpow2.f32 %v185_v48 }
 0x202   :  { %331 = vpow2.f32 %v187_v49 }
 0x20e   :  { %v330_v50 = vpop.eup %329 }
 0x20f   :  { %v332_v51 = vpop.eup %331  ;;  %192 = vperm.xlu1 %319, %v330_v50  }
 0x210   :  { %195 = vperm.xlu0 %320, %v332_v51  }
 0x28a   :  { %v193_v52 = vpop.permute.xlu1 %192 }
 0x28b   :  { %v196_v53 = vpop.permute.xlu0 %195  ;;  %v200_v54 = vrot.slane %v193_v52, %v159_v35 }
 0x28c   :  { %v204_v55 = vrot.slane %v196_v53, %v159_v35 }
 0x28e   :  { %v205_v56 = vsel %vm165_vm2, %v204_v55, %v200_v54 }
 0x28f   :  { %v207_v57 = vsel %vm168_vm3, %v205_v56, 0.0 }
 0x290   :  { %208 = vadd.xlane.f32.xlu1 %v207_v57 }
 0x319   :  { %v209_v58 = vpop.xlane.xlu1 %208 }
 0x31a   :  { %333 = vrcp.f32 %v209_v58 }
 0x327   :  { %v334_v59 = vpop.eup %333 }
 0x328   :  { %v215_v60 = vrot.slane %v334_v59, %v440_v12  ;;  %v219_v62 = vrot.slane %v334_v59, %v179_v42 }
 0x32a   :  { %v222_v61 = vmul.f32 %v330_v50, %v215_v60  ;;  %v223_v63 = vmul.f32 %v332_v51, %v219_v62 }
 0x32c   :  { %226 = vperm.xlu0 %320, %v222_v61  }
 0x330   :  { %231 = vperm.xlu0 %320, %v223_v63  }
 0x3a7   :  { %v227_v1 = vpop.permute.xlu0 %226 }
 0x3a8   :  { %v234_v2 = vmul.f32 %v227_v1, %v27_v0  ;;  %v253_v8 = vrot.slane %v227_v1, %v159_v35 }
 0x3aa   :  { %v236_v5 = vsel %vm46_vm1, %v234_v2, 0.0 }
 0x3ab   :  { %v237_v6 = vrot.slane %v236_v5, 4  ;;  %v232_v7 = vpop.permute.xlu0 %231 }
 0x3ac   :  { %v235_v9 = vmul.f32 %v232_v7, %v28_v4  ;;  %v257_v10 = vrot.slane %v232_v7, %v159_v35 }
 0x3ad   :  { %v238_v11 = vadd.f32 %v237_v6, %v236_v5 }
 0x3ae   :  { %v243_v12 = vsel %vm46_vm1, %v235_v9, 0.0  ;;  %v258_v13 = vsel %vm165_vm2, %v257_v10, %v253_v8 }
 0x3af   :  { %v239_v14 = vrot.slane %v238_v11, 2  ;;  %v244_v15 = vrot.slane %v243_v12, 4  ;;  %260 = vst.msk [vmem:[#allocation4] sm:$0x3] %vm168_vm3, %v258_v13 }
 0x3b0   :  { %346 = shalt.err (!%p343_p4)
}
 0x3b1   :  { %286 = dma.vmem_to_hbm [thread:$0]  %s284_s4, 32, %s479_s6, [#allocation5]   ;;  %v240_v3 = vadd.f32 %v239_v14, %v238_v11  ;;  %v245_v16 = vadd.f32 %v244_v15, %v243_v12  ;;  %vm265_vm4 = vcmask 254976  }
 0x3b2   :  { %s384_s9 = smov [#allocation2]  }
 0x3b3   :  { %v246_v17 = vrot.slane %v245_v16, 2  ;;  %v241_v19 = vrot.slane %v240_v3, 1  ;;  %s273_s10 = sshll.u32 %s384_s9, 4  ;;  %s274_s10 = int_to_ptr.vmem [resolvable:$true] %s273_s10 }
 0x3b4   :  { %s355_s11 = scalar_lea.vmem %s274_s10, 32  ;;  %p360_p6 = scmp.lt.s32.totalorder %s274_s10, %s274_s10 }
 0x3b5   :  { %v247_v18 = vadd.f32 %v246_v17, %v245_v16  ;;  %v242_v21 = vadd.f32 %v241_v19, %v240_v3  ;;  %p356_p5 = scmp.ne.s32.totalorder %s274_s10, %s355_s11  ;;  %p361_p7 = scmp.lt.s32.totalorder %s355_s11, %s355_s11 }
 0x3b7   :  { %v248_v20 = vrot.slane %v247_v18, 1  ;;  %p362_p8 = por %p361_p7, %p360_p6 }
 0x3b9   :  { %v249_v22 = vadd.f32 %v248_v20, %v247_v18  ;;  %p363_p9 = pnand %p362_p8, %p356_p5 }
 0x3bb   :  { %v263_v23 = vsel %vm165_vm2, %v249_v22, %v242_v21 }
 0x3bc   :  { %266 = vst.msk [vmem:[#allocation2] sm:$0x3] %vm265_vm4, %v263_v23 }
 0x3bd   :  { %366 = shalt.err (!%p363_p9)
}
 0x3be   :  { %276 = dma.vmem_to_hbm [thread:$0]  %s274_s10, 32, %s478_s5, [#allocation3]  }
 0x3bf   :  { %375 = dma.done.wait [#allocation3], 32  }
 0x3c0   :  { %376 = vsyncadd [#allocation3], 4294967264 }
 0x3c1   :  { %377 = dma.done.wait [#allocation5], 32  }
 0x3c2   :  { %378 = vsyncadd [#allocation5], 4294967264 }
 0x3c3   :  { %293 = vsyncpa [#allocation3], 1 }
 0x3c4   :  { %294 = vsyncpa [#allocation5], 1 }

</bundles_post_ra>
